<compile_context>
chip_gen: v5e
topology: v5e:2x2
jax: 0.10.0
libtpu: 0.0.40
codegen_flags: <defaults>
</compile_context>

<pallas_src>
import functools
import math

import jax
import jax.numpy as jnp
from jax.experimental import pallas as pl
from jax.experimental.pallas import tpu as pltpu


# ----------------------------- in-kernel helpers -----------------------------

_SQRT_2_OVER_PI = math.sqrt(2.0 / math.pi)


def _gelu_tanh(x):
    # tanh-approx GELU: 1 EUP tanh + a handful of VALU ops.
    # Deviates <= ~1e-3 from the exact erf GELU (well inside the test tolerance).
    inner = _SQRT_2_OVER_PI * (x + 0.044715 * (x * x * x))
    return 0.5 * x * (1.0 + jnp.tanh(inner))


def _gelu_exact(x):
    # Exact (erf) GELU matching PyTorch nn.GELU() default.  A&S 7.1.26 erf,
    # |err| <= 1.5e-7; the divide is routed to the EUP via pl.reciprocal.
    a1, a2, a3, a4, a5 = (0.254829592, -0.284496736, 1.421413741,
                          -1.453152027, 1.061405429)
    p = 0.3275911
    z = x * (1.0 / math.sqrt(2.0))
    s = jnp.where(z >= 0.0, 1.0, -1.0)
    az = jnp.abs(z)
    t = pl.reciprocal(1.0 + p * az, approx=True)
    poly = ((((a5 * t + a4) * t + a3) * t + a2) * t + a1) * t
    erf = s * (1.0 - poly * jnp.exp(-az * az))
    return 0.5 * x * (1.0 + erf)


# --------------------------------- kernel ------------------------------------

def _mlp_kernel(x_ref, w1_ref, w2_ref, o_ref, acc_ref, *, approximate_gelu):
    j = pl.program_id(1)                     # d_hidden reduction axis (last, "arbitrary")

    @pl.when(j == 0)
    def _init():
        acc_ref[...] = jnp.zeros_like(acc_ref)

    # bf16 MXU operands, f32 accumulation.
    x = x_ref[...].astype(jnp.bfloat16)                                   # [bm, d_in]
    h = jnp.dot(x, w1_ref[...], preferred_element_type=jnp.float32)       # [bm, th] f32
    h = _gelu_tanh(h) if approximate_gelu else _gelu_exact(h)             # f32 elementwise
    acc_ref[...] += jnp.dot(h.astype(jnp.bfloat16), w2_ref[...],
                            preferred_element_type=jnp.float32)           # [bm, d_out]

    @pl.when(j == pl.num_programs(1) - 1)
    def _finalize():
        o_ref[...] = acc_ref[...].astype(o_ref.dtype)


# --------------------------------- wrapper -----------------------------------

def _round_up(n, m):
    return (n + m - 1) // m * m


def mlp_forward(x, w1, w2, *, block_rows=256, block_hidden=512, approximate_gelu=True):
    """MLP forward: linear_2(GELU(linear_1(x))), no biases.

    x : [..., d_in]        (f32)
    w1: [d_in, d_hidden]   (PyTorch linear_1.weight.T)
    w2: [d_hidden, d_out]  (PyTorch linear_2.weight.T)
    """
    *lead, d_in = x.shape
    d_hidden = w1.shape[1]
    d_out = w2.shape[1]
    assert w1.shape[0] == d_in and w2.shape[0] == d_hidden

    # bf16 weights: half the DMA bytes / weight VMEM; f32 accumulation in-kernel.
    w1 = w1.astype(jnp.bfloat16)
    w2 = w2.astype(jnp.bfloat16)

    # Fold leading dims into matmul rows -> full-width MXU tiles.
    x2 = x.reshape(-1, d_in)
    m = x2.shape[0]

    # Row tile (f32 sublane = 8).  Ensure >=2 row tiles whenever m > 8 so the
    # "parallel" axis actually shards across both TensorCores on v7x.
    bm = min(block_rows, _round_up(m, 8))
    if m > 8:
        bm = min(bm, _round_up((m + 1) // 2, 8))
    mp = _round_up(m, bm)
    if mp != m:
        # TODO(synk): pad only the tail row tile instead of a full-array pad for large m.
        x2 = jnp.pad(x2, ((0, mp - m), (0, 0)))

    # Hidden (reduction) tile: bounds weight VMEM regardless of model width.
    if d_hidden <= block_hidden or d_hidden % block_hidden != 0:
        th = d_hidden
    else:
        th = block_hidden

    grid = (mp // bm, d_hidden // th)

    # Per-step VMEM footprint (double-buffered ins/outs + f32 accumulator) -> explicit limit.
    out_itemsize = jnp.dtype(x.dtype).itemsize
    vmem_bytes = (2 * bm * d_in * x2.dtype.itemsize       # x tiles
                  + 2 * d_in * th * 2                     # w1 tiles (bf16)
                  + 2 * th * d_out * 2                    # w2 tiles (bf16)
                  + 2 * bm * d_out * out_itemsize         # out tiles
                  + bm * d_out * 4)                       # f32 accumulator
    vmem_limit = int(min(64 * 1024 * 1024, max(2 * vmem_bytes, 16 * 1024 * 1024)))

    cost = pl.CostEstimate(
        flops=2 * m * (d_in * d_hidden + d_hidden * d_out),
        transcendentals=m * d_hidden,
        bytes_accessed=(x2.size * x2.dtype.itemsize
                        + w1.size * w1.dtype.itemsize
                        + w2.size * w2.dtype.itemsize
                        + mp * d_out * out_itemsize),
    )

    kernel = functools.partial(_mlp_kernel, approximate_gelu=approximate_gelu)

    out = pl.pallas_call(
        kernel,
        out_shape=jax.ShapeDtypeStruct((mp, d_out), x.dtype),
        grid=grid,
        in_specs=[
            pl.BlockSpec((bm, d_in), lambda i, j: (i, 0)),    # x rows (resident over j)
            pl.BlockSpec((d_in, th), lambda i, j: (0, j)),    # w1 hidden tile
            pl.BlockSpec((th, d_out), lambda i, j: (j, 0)),   # w2 hidden tile
        ],
        out_specs=pl.BlockSpec((bm, d_out), lambda i, j: (i, 0)),
        scratch_shapes=[pltpu.VMEM((bm, d_out), jnp.float32)],
        compiler_params=pltpu.CompilerParams(
            dimension_semantics=("parallel", "arbitrary"),
            vmem_limit_bytes=vmem_limit,
        ),
        cost_estimate=cost,
    )(x2, w1, w2)

    return out[:m].reshape(*lead, d_out)


# --------------------------- pure-JAX reference -------------------------------

def reference_forward(x, w1, w2):
    return jax.nn.gelu(x @ w1, approximate=False) @ w2


# ------------------------------------ main ------------------------------------

if __name__ == "__main__":
    B, S = 2, 8
    d_in, d_hidden, d_out = 128, 256, 128     # lane-dense (multiples of 128)

    k0, k1, k2 = jax.random.split(jax.random.PRNGKey(0), 3)
    x = jax.random.normal(k0, (B, S, d_in), jnp.float32)
    w1 = (0.02 * jax.random.normal(k1, (d_in, d_hidden))).astype(jnp.float32)
    w2 = (0.02 * jax.random.normal(k2, (d_hidden, d_out))).astype(jnp.float32)

    out = mlp_forward(x, w1, w2)
    out = jax.block_until_ready(out)

    ref = reference_forward(x, w1, w2)
    assert out.shape == (B, S, d_out)
    assert bool(jnp.all(jnp.isfinite(out)))
    max_err = float(jnp.max(jnp.abs(out - ref)))
    # bf16 MXU operands + tanh GELU: expected max abs error ~1e-3 at these scales.
    assert bool(jnp.allclose(out, ref, atol=1e-2, rtol=1e-2)), max_err

    print("KERNEL_OK")
</pallas_src>

<mosaic_0001>
module attributes {stable_mosaic.version = 11 : i64} {
  func.func @_mlp_kernel(%arg0: i32, %arg1: i32, %arg2: memref<8x128xf32, #tpu.memory_space<vmem>>, %arg3: memref<128x256xbf16, #tpu.memory_space<vmem>>, %arg4: memref<256x128xbf16, #tpu.memory_space<vmem>>, %arg5: memref<8x128xf32, #tpu.memory_space<vmem>>, %arg6: memref<8x128xf32, #tpu.memory_space<vmem>>) attributes {dimension_semantics = [#tpu.dimension_semantics<parallel>, #tpu.dimension_semantics<arbitrary>], iteration_bounds = array<i64: 2, 1>, scalar_prefetch = 0 : i64, scratch_operands = 1 : i64, tpu.core_type = #tpu.core_type<tc>, window_params = [{transform_indices = @transform_0, window_bounds = array<i64: 8, 128>}, {transform_indices = @transform_1, window_bounds = array<i64: 128, 256>}, {transform_indices = @transform_2, window_bounds = array<i64: 256, 128>}, {transform_indices = @transform_3, window_bounds = array<i64: 8, 128>}]} {
    %c0_i32 = arith.constant 0 : i32
    %0 = arith.cmpi eq, %arg1, %c0_i32 : i32
    %1 = arith.extui %0 : i1 to i32
    %c0_i32_0 = arith.constant 0 : i32
    %2 = arith.cmpi ne, %1, %c0_i32_0 : i32
    scf.if %2 {
      %cst_17 = arith.constant 0.000000e+00 : f32
      %29 = vector.broadcast %cst_17 : f32 to vector<8x128xf32>
      %c0_18 = arith.constant 0 : index
      %c0_19 = arith.constant 0 : index
      %30 = vector.load %arg6[%c0_18, %c0_19] : memref<8x128xf32, #tpu.memory_space<vmem>>, vector<8x128xf32>
      tpu.vector_store %arg6[%c0_18, %c0_19], %29 {strides = array<i32>} : memref<8x128xf32, #tpu.memory_space<vmem>>, vector<8x128xf32>,
    } else {
    }
    %c0 = arith.constant 0 : index
    %c0_1 = arith.constant 0 : index
    %3 = vector.load %arg2[%c0, %c0_1] : memref<8x128xf32, #tpu.memory_space<vmem>>, vector<8x128xf32>
    %4 = arith.truncf %3 : vector<8x128xf32> to vector<8x128xbf16>
    %c0_2 = arith.constant 0 : index
    %c0_3 = arith.constant 0 : index
    %5 = vector.load %arg3[%c0_2, %c0_3] : memref<128x256xbf16, #tpu.memory_space<vmem>>, vector<128x256xbf16>
    %cst = arith.constant dense<0.000000e+00> : vector<8x256xf32>
    %6 = tpu.matmul %4, %5, %cst {dimension_numbers = #tpu.dot_dimension_numbers<[1], [0], [0], [1], [0, 0, 1, 1], [], []>} : vector<8x128xbf16>, vector<128x256xbf16>, vector<8x256xf32> -> vector<8x256xf32>
    %7 = arith.mulf %6, %6 : vector<8x256xf32>
    %8 = arith.mulf %7, %6 : vector<8x256xf32>
    %cst_4 = arith.constant 4.471500e-02 : f32
    %9 = vector.broadcast %cst_4 : f32 to vector<8x256xf32>
    %10 = arith.mulf %9, %8 : vector<8x256xf32>
    %11 = arith.addf %6, %10 : vector<8x256xf32>
    %cst_5 = arith.constant 0.797884583 : f32
    %12 = vector.broadcast %cst_5 : f32 to vector<8x256xf32>
    %13 = arith.mulf %12, %11 : vector<8x256xf32>
    %cst_6 = arith.constant 5.000000e-01 : f32
    %14 = vector.broadcast %cst_6 : f32 to vector<8x256xf32>
    %15 = arith.mulf %14, %6 : vector<8x256xf32>
    %16 = math.tanh %13 : vector<8x256xf32>
    %cst_7 = arith.constant 1.000000e+00 : f32
    %17 = vector.broadcast %cst_7 : f32 to vector<8x256xf32>
    %18 = arith.addf %17, %16 : vector<8x256xf32>
    %19 = arith.mulf %15, %18 : vector<8x256xf32>
    %c0_8 = arith.constant 0 : index
    %c0_9 = arith.constant 0 : index
    %20 = vector.load %arg6[%c0_8, %c0_9] : memref<8x128xf32, #tpu.memory_space<vmem>>, vector<8x128xf32>
    %21 = arith.truncf %19 : vector<8x256xf32> to vector<8x256xbf16>
    %c0_10 = arith.constant 0 : index
    %c0_11 = arith.constant 0 : index
    %22 = vector.load %arg4[%c0_10, %c0_11] : memref<256x128xbf16, #tpu.memory_space<vmem>>, vector<256x128xbf16>
    %cst_12 = arith.constant dense<0.000000e+00> : vector<8x128xf32>
    %23 = tpu.matmul %21, %22, %cst_12 {dimension_numbers = #tpu.dot_dimension_numbers<[1], [0], [0], [1], [0, 0, 1, 1], [], []>} : vector<8x256xbf16>, vector<256x128xbf16>, vector<8x128xf32> -> vector<8x128xf32>
    %24 = arith.addf %20, %23 : vector<8x128xf32>
    %c0_13 = arith.constant 0 : index
    %c0_14 = arith.constant 0 : index
    %25 = vector.load %arg6[%c0_13, %c0_14] : memref<8x128xf32, #tpu.memory_space<vmem>>, vector<8x128xf32>
    tpu.vector_store %arg6[%c0_13, %c0_14], %24 {strides = array<i32>} : memref<8x128xf32, #tpu.memory_space<vmem>>, vector<8x128xf32>,
    %c0_i32_15 = arith.constant 0 : i32
    %26 = arith.cmpi eq, %arg1, %c0_i32_15 : i32
    %27 = arith.extui %26 : i1 to i32
    %c0_i32_16 = arith.constant 0 : i32
    %28 = arith.cmpi ne, %27, %c0_i32_16 : i32
    scf.if %28 {
      %c0_17 = arith.constant 0 : index
      %c0_18 = arith.constant 0 : index
      %29 = vector.load %arg6[%c0_17, %c0_18] : memref<8x128xf32, #tpu.memory_space<vmem>>, vector<8x128xf32>
      %c0_19 = arith.constant 0 : index
      %c0_20 = arith.constant 0 : index
      %30 = vector.load %arg5[%c0_19, %c0_20] : memref<8x128xf32, #tpu.memory_space<vmem>>, vector<8x128xf32>
      tpu.vector_store %arg5[%c0_19, %c0_20], %29 {strides = array<i32>} : memref<8x128xf32, #tpu.memory_space<vmem>>, vector<8x128xf32>,
    } else {
    }
    return
  }
  func.func @transform_0(%arg0: i32, %arg1: i32) -> (i32, i32) {
    %c0_i32 = arith.constant 0 : i32
    %c0_i32_0 = arith.constant 0 : i32
    return %arg0, %c0_i32 : i32, i32
  }
  func.func @transform_1(%arg0: i32, %arg1: i32) -> (i32, i32) {
    %c0_i32 = arith.constant 0 : i32
    %c0_i32_0 = arith.constant 0 : i32
    return %c0_i32, %arg1 : i32, i32
  }
  func.func @transform_2(%arg0: i32, %arg1: i32) -> (i32, i32) {
    %c0_i32 = arith.constant 0 : i32
    %c0_i32_0 = arith.constant 0 : i32
    return %arg1, %c0_i32 : i32, i32
  }
  func.func @transform_3(%arg0: i32, %arg1: i32) -> (i32, i32) {
    %c0_i32 = arith.constant 0 : i32
    %c0_i32_0 = arith.constant 0 : i32
    return %arg0, %c0_i32 : i32, i32
  }
}

</mosaic_0001>

<bundles_post_ra>
// kernel: tpu_custom_call.1
= control target key start
LH: loop header
LB: loop body
LE: loop exit
PB: predicated region body
PF: predicated region fallthrough
CT: control target
= control target key end

     0   :  { %8 = vsyncpa [#allocation4], 0  ;;  %s1302_s0 = inlined_call_operand.hbm [shape: f32[16,128], index: 0, kind: input, shape index: {}]   ;;  %s1303_s1 = inlined_call_operand.hbm [shape: bf16[128,256], index: 1, kind: input, shape index: {}]   ;;  %s1304_s2 = inlined_call_operand.hbm [shape: bf16[256,128], index: 2, kind: input, shape index: {}]   ;;  %s1305_s3 = inlined_call_operand.hbm [shape: f32[16,128], index: 3, kind: output, shape index: {}]  }
   0x1   :  { %10 = vsyncpa [#allocation4 + $0x1], 0 }
   0x2   :  { %11 = vsyncpa [#allocation7], 0 }
   0x3   :  { %12 = vsyncpa [#allocation5], 0 }
   0x4   :  { %14 = vsyncpa [#allocation5 + $0x1], 0  ;;  %s1151_s12 = smov 0   ;;  %s1153_s13 = smov 0  }
   0x5   :  { %s1155_s14 = smov 0   ;;  %s1157_s15 = smov 0  }
   0x6   :  { %s1159_s16 = smov 0   ;;  %s1161_s17 = smov 0  }
   0x7 LB: > { %s679_s18 = sadd.s32 4294967295, %s1123_s17   ;;  %p681_p0 = scmp.ge.s32.totalorder %s1123_s17, 1  ;;  %s1123_s17 = sphi %s1161_s17, %s20_s17   ;;  %s1119_s16 = sphi %s1159_s16, %s1315_s16   ;;  %s1115_s15 = sphi %s1157_s15, %s1314_s15   ;;  %s1111_s14 = sphi %s1155_s14, %s1313_s14   ;;  %s1107_s13 = sphi %s1153_s13, %s1312_s13   ;;  %s1103_s12 = sphi %s1151_s12, %s1311_s12  }
   0x8   : > { %p1185_p1 = scmp.eq.s32.totalorder %s679_s18, 0  ;;  %p141_p2 = scmp.lt.s32.totalorder %s1123_s17, 3 }
   0x9   : > { %s155_s22 = sshll.u32 %s1303_s1, 4  ;;  %s1125_s24 = smov [#allocation6]   ;;  %s156_s22 = int_to_ptr.hbm [resolvable:$true] %s155_s22 }
   0xa   : > { %p1193_p3 = pnand %p681_p0, %p141_p2  ;;  %s157_s25 = sshll.u32 %s1125_s24, 4  ;;  %s158_s25 = int_to_ptr.vmem [resolvable:$true] %s157_s25 }
   0xb   : > { %p684_p6 = scmp.ge.s32.totalorder %s1123_s17, 2  ;;  %s172_s28 = sshll.u32 %s1304_s2, 4  ;;  %s173_s28 = int_to_ptr.hbm [resolvable:$true] %s172_s28 }
   0xc   : > { %p868_p4 = pneg %p1193_p3  ;;  %s1126_s29 = smov 128  }
   0xd   : > { %s1127_s30 = smov 8   ;;  %s1128_s4 = smov [#allocation8]  }
   0xe   : > { %p869_p5 = pnand %p868_p4, %p1185_p1  ;;  %s174_s5 = sshll.u32 %s1128_s4, 4  ;;  %s175_s5 = int_to_ptr.vmem [resolvable:$true] %s174_s5 }
   0xf   : > { %s1129_s6 = smov 64   ;;  %s1130_s7 = smov 4  }
  0x10   : > { %871 = dma.hbm_to_vmem [thread:$0]  (!%p869_p5), %s156_s22, 2048, %s158_s25, [#allocation7], %s1126_s29, %s1126_s29, %s1127_s30  }
  0x11   : > { %874 = dma.hbm_to_vmem [thread:$0]  (!%p869_p5), %s173_s28, 2048, %s175_s5, [#allocation7], %s1129_s6, %s1129_s6, %s1130_s7  }
  0x12   : > { %s32_s8 = sadd.s32 1, %s1119_s16  ;;  %s680_s9 = sadd.s32 4294967294, %s1123_s17  }
  0x13   : > { %p34_p7 = scmp.ge.s32.totalorder %s32_s8, 2  ;;  %s39_s10 = sadd.s32 1, %s1111_s14 }
  0x14   : > { %p46_p8 = scmp.ne.s32.totalorder %s1111_s14, %s1107_s13  ;;  %p47_p9 = scmp.eq.s32.totalorder %s1123_s17, 0 }
  0x15   : > { %s1317_s8 = smov (%p34_p7, %s32_s8), 0  ;;  %p52_p10 = scmp.ne.s32.totalorder %s1107_s13, %s1103_s12 }
  0x16   : > { %s36_s11 = ssub.s32 %s1119_s16, %s1317_s8  ;;  %p128_p11 = scmp.eq.s32.totalorder %s679_s18, 1 }
  0x17   : > { %p37_p12 = scmp.eq.s32.totalorder %s36_s11, 0  ;;  %p1221_p13 = por %p1185_p1, %p52_p10 }
  0x18   : > { %p1225_p0 = por %p128_p11, %p46_p8  ;;  %p134_p2 = scmp.eq.s32.totalorder %s680_s9, 1 }
  0x19   : > { %s1230_s22 = scalar_select %p37_p12, %s1111_s14, %s39_s10  }
  0x1a   : > { %p48_p4 = por %p47_p9, %p46_p8  ;;  %p1232_p5 = por %p134_p2, %p52_p10 }
  0x1b   : > { %s188_s25 = sand.u32 1, %s1111_s14   ;;  %s686_s18 = sshll.u32 %s1119_s16, 3 }
  0x1c   : > { %p885_p7 = scmp.lt.s32.totalorder %s1123_s17, 2  ;;  %s685_s26 = sshll.u32 %s188_s25, 3 }
  0x1d   : > { %s196_s29 = scalar_lea.hbm %s1302_s0, %s686_s18  ;;  %s192_s4 = scalar_lea.vmem [#allocation3], %s685_s26 }
  0x1e   : > { %s198_s30 = sshll.u32 %s196_s29, 4  ;;  %s200_s5 = sshll.u32 %s192_s4, 4  ;;  %s199_s30 = int_to_ptr.hbm [resolvable:$true] %s198_s30  ;;  %s201_s5 = int_to_ptr.vmem [resolvable:$true] %s200_s5 }
  0x1f   : > { %p876_p11 = pnand %p885_p7, %p48_p4  ;;  %s189_s6 = scalar_lea.sflag [#allocation4], %s188_s25 }
  0x20   : > { %209 = sbr.rel (%p1193_p3) target bundleno = 364 (0x16c), region = 32  ;;  %s1245_s7 = sand.u32 (!%p1193_p3), 1, %s1107_s13  }
  0x21   : > { %878 = dma.hbm_to_vmem [thread:$0]  (!%p876_p11), %s199_s30, 128, %s201_s5, %s189_s6  }
  0x22   : > { %s688_s9 = sshll.u32 (!%p1193_p3), %s1245_s7, 3  ;;  %s212_s10 = scalar_lea.sflag (!%p1193_p3), [#allocation4], %s1245_s7 }
  0x23   : > { %s1251_s11 = scalar_lea.vmem (!%p1193_p3), [#allocation3], %s688_s9 }
  0x25   : > { %1090 = dma.done.wait (%p1221_p13), %s212_s10, 128  }
  0x26   : > { %1092 = vsyncadd (%p1221_p13), %s212_s10, 4294967168 }
  0x27   : > { %1094 = dma.done.wait (%p1185_p1), [#allocation7], 4096  }
  0x28   : > { %1096 = vsyncadd (%p1185_p1), [#allocation7], 4294963200  ;;  %v750_v0 = vld [vmem:[#allocation6 + $0x70] sm:$0xf]  ;;  %v839_v1 = vld [vmem:[#allocation6 + $0x74] sm:$0xf0] }
  0x29   : > { %v838_v2 = vld [vmem:[#allocation6 + $0x74] sm:$0xf]  ;;  %v751_v3 = vor.u32 %v839_v1, %v750_v0  ;;  %v752_v4 = vld [vmem:[#allocation6 + $0x78] sm:$0xf0]  ;;  %v742_v5 = vld [vmem:[#allocation6 + $0x60] sm:$0xf] }
  0x2a   : > { %v837_v6 = vld [vmem:[#allocation6 + $0x64] sm:$0xf0]  ;;  %v755_v7 = vor.u32 %v838_v2, %v752_v4  ;;  %v836_v8 = vld [vmem:[#allocation6 + $0x64] sm:$0xf]  ;;  %v744_v9 = vld [vmem:[#allocation6 + $0x68] sm:$0xf0] }
  0x2b   : > { %354 = vmatpush.bf16.msra.mxu0 %v751_v3  ;;  %v743_v10 = vor.u32 %v837_v6, %v742_v5  ;;  %v747_v11 = vor.u32 %v836_v8, %v744_v9  ;;  %v734_v12 = vld [vmem:[#allocation6 + $0x50] sm:$0xf]  ;;  %v835_v13 = vld [vmem:[#allocation6 + $0x54] sm:$0xf0]  ;;  %v834_v14 = vld [vmem:[#allocation6 + $0x54] sm:$0xf] }
  0x2c   : > { %367 = vmatpush.bf16.msra.mxu1 %v755_v7  ;;  %v736_v15 = vld [vmem:[#allocation6 + $0x58] sm:$0xf0]  ;;  %v735_v16 = vor.u32 %v835_v13, %v734_v12  ;;  %v726_v18 = vld [vmem:[#allocation6 + $0x40] sm:$0xf]  ;;  %v833_v19 = vld [vmem:[#allocation6 + $0x44] sm:$0xf0] }
  0x2d   : > { %v739_v17 = vor.u32 %v834_v14, %v736_v15  ;;  %v832_v20 = vld [vmem:[#allocation6 + $0x44] sm:$0xf]  ;;  %v728_v21 = vld [vmem:[#allocation6 + $0x48] sm:$0xf0]  ;;  %v727_v22 = vor.u32 %v833_v19, %v726_v18  ;;  %v847_v23 = vld [vmem:[#allocation8 + $0x38] sm:$0xff]  ;;  %s821_s19 = sshll.u32 %s1115_s15, 3 }
  0x2e   : > { %v855_v24 = vld [vmem:[#allocation8 + $0x78] sm:$0xff]  ;;  %v731_v25 = vor.u32 %v832_v20, %v728_v21  ;;  %v718_v26 = vld [vmem:[#allocation6 + $0x30] sm:$0xf]  ;;  %v830_v28 = vld [vmem:[#allocation6 + $0x34] sm:$0xf]  ;;  %529 = vmatpush.bf16.msra.mxu2 %v847_v23  ;;  %s573_s25 = scalar_lea.hbm %s1305_s3, %s821_s19  ;;  %s248_s18 = scalar_lea.vmem [#allocation9], %s688_s9 }
  0x2f   : > { %355 = vmatpush.bf16.msra.mxu0 %v743_v10  ;;  %v831_v27 = vld [vmem:[#allocation6 + $0x34] sm:$0xf0]  ;;  %v720_v29 = vld [vmem:[#allocation6 + $0x38] sm:$0xf0]  ;;  %542 = vmatpush.bf16.msra.mxu3 %v855_v24  ;;  %v846_v30 = vld [vmem:[#allocation8 + $0x30] sm:$0xff]  ;;  %s575_s26 = sshll.u32 %s248_s18, 4  ;;  %s576_s26 = int_to_ptr.vmem [resolvable:$true] %s575_s26 }
  0x30   : > { %368 = vmatpush.bf16.msra.mxu1 %v747_v11  ;;  %v854_v31 = vld [vmem:[#allocation8 + $0x70] sm:$0xff]  ;;  %v719_v32 = vor.u32 %v831_v27, %v718_v26  ;;  %v723_v33 = vor.u32 %v830_v28, %v720_v29  ;;  %v710_v34 = vld [vmem:[#allocation6 + $0x20] sm:$0xf]  ;;  %v829_v35 = vld [vmem:[#allocation6 + $0x24] sm:$0xf0]  ;;  %s577_s27 = sshll.u32 %s573_s25, 4  ;;  %s578_s27 = int_to_ptr.hbm [resolvable:$true] %s577_s27 }
  0x31   : > { %v828_v36 = vld [vmem:[#allocation6 + $0x24] sm:$0xf]  ;;  %v712_v37 = vld [vmem:[#allocation6 + $0x28] sm:$0xf0]  ;;  %v711_v38 = vor.u32 %v829_v35, %v710_v34  ;;  %v702_v40 = vld [vmem:[#allocation6 + $0x10] sm:$0xf] }
  0x32   : > { %530 = vmatpush.bf16.msra.mxu2 %v846_v30  ;;  %v715_v39 = vor.u32 %v828_v36, %v712_v37  ;;  %v827_v41 = vld [vmem:[#allocation6 + $0x14] sm:$0xf0]  ;;  %v826_v42 = vld [vmem:[#allocation6 + $0x14] sm:$0xf]  ;;  %v704_v43 = vld [vmem:[#allocation6 + $0x18] sm:$0xf0] }
  0x33   : > { %356 = vmatpush.bf16.msra.mxu0 %v735_v16  ;;  %543 = vmatpush.bf16.msra.mxu3 %v854_v31  ;;  %v703_v44 = vor.u32 %v827_v41, %v702_v40  ;;  %v707_v45 = vor.u32 %v826_v42, %v704_v43  ;;  %v694_v46 = vld [vmem:[#allocation6] sm:$0xf]  ;;  %v825_v47 = vld [vmem:[#allocation6 + $0x4] sm:$0xf0]  ;;  %v824_v48 = vld [vmem:[#allocation6 + $0x4] sm:$0xf] }
  0x34   : > { %369 = vmatpush.bf16.msra.mxu1 %v739_v17  ;;  %v696_v49 = vld [vmem:[#allocation6 + $0x8] sm:$0xf0]  ;;  %v695_v50 = vor.u32 %v825_v47, %v694_v46  ;;  %v256_v51 = vld [vmem:[%s1251_s11] sm:$0xff]  ;;  %v844_v56 = vld [vmem:[#allocation8 + $0x20] sm:$0xff]  ;;  %s563_s28 = scalar_lea.sflag [#allocation5], %s1245_s7  ;;  %s1051_s29 = sshra.s32 %s578_s27, 4  ;;  %s1052_s29 = int_to_ptr.hbm [resolvable:$true] %s1051_s29 }
  0x35   : > { %v699_v52 = vor.u32 %v824_v48, %v696_v49  ;;  %v257_v53 = vpack.c.bf16 %v256_v51, %v256_v51  ;;  %v845_v54 = vld [vmem:[#allocation8 + $0x28] sm:$0xff]  ;;  %v852_v57 = vld [vmem:[#allocation8 + $0x60] sm:$0xff]  ;;  %v843_v58 = vld [vmem:[#allocation8 + $0x18] sm:$0xff]  ;;  %s1053_s30 = scalar_lea.hbm %s1052_s29, 8  ;;  %s1057_s5 = scalar_lea.hbm %s1305_s3, 16 }
  0x36   : > { %v853_v55 = vld [vmem:[#allocation8 + $0x68] sm:$0xff]  ;;  %531 = vmatpush.bf16.msra.mxu2 %v845_v54  ;;  %v851_v59 = vld [vmem:[#allocation8 + $0x58] sm:$0xff]  ;;  %v842_v60 = vld [vmem:[#allocation8 + $0x10] sm:$0xff]  ;;  %p1054_p1 = scmp.ne.s32.totalorder %s1052_s29, %s1053_s30  ;;  %p1058_p9 = scmp.lt.s32.totalorder %s1052_s29, %s1305_s3 }
  0x37   : > { %357 = vmatpush.bf16.msra.mxu0 %v727_v22  ;;  %544 = vmatpush.bf16.msra.mxu3 %v853_v55  ;;  %v850_v61 = vld [vmem:[#allocation8 + $0x50] sm:$0xff]  ;;  %v841_v62 = vld [vmem:[#allocation8 + $0x8] sm:$0xff]  ;;  %v840_v0 = vld [vmem:[#allocation8] sm:$0xff]  ;;  %p1059_p10 = scmp.lt.s32.totalorder %s1057_s5, %s1053_s30 }
  0x38   : > { %370 = vmatpush.bf16.msra.mxu1 %v731_v25  ;;  %v849_v63 = vld [vmem:[#allocation8 + $0x48] sm:$0xff]  ;;  %v848_v1 = vld [vmem:[#allocation8 + $0x40] sm:$0xff]  ;;  %p1055_p3 = pnand %p1054_p1, %p1225_p0 }
  0x39   : > { %p1060_p12 = por %p1059_p10, %p1058_p9 }
  0x3a   : > { %532 = vmatpush.bf16.msra.mxu2 %v844_v56  ;;  %p1056_p8 = pneg %p1055_p3 }
  0x3b   : > { %358 = vmatpush.bf16.msra.mxu0 %v719_v32  ;;  %545 = vmatpush.bf16.msra.mxu3 %v852_v57 }
  0x3c   : > { %371 = vmatpush.bf16.msra.mxu1 %v723_v33  ;;  %p1061_p13 = pnand %p1060_p12, %p1056_p8 }
  0x3e   : > { %533 = vmatpush.bf16.msra.mxu2 %v843_v58 }
  0x3f   : > { %359 = vmatpush.bf16.msra.mxu0 %v711_v38  ;;  %546 = vmatpush.bf16.msra.mxu3 %v851_v59 }
  0x40   : > { %372 = vmatpush.bf16.msra.mxu1 %v715_v39 }
  0x42   : > { %534 = vmatpush.bf16.msra.mxu2 %v842_v60 }
  0x43   : > { %360 = vmatpush.bf16.msra.mxu0 %v703_v44  ;;  %547 = vmatpush.bf16.msra.mxu3 %v850_v61 }
  0x44   : > { %373 = vmatpush.bf16.msra.mxu1 %v707_v45 }
  0x46   : > { %535 = vmatpush.bf16.msra.mxu2 %v841_v62 }
  0x47   : > { %361 = vmatpush.bf16.msra.mxu0 %v695_v50  ;;  %548 = vmatpush.bf16.msra.mxu3 %v849_v63 }
  0x48   : > { %374 = vmatpush.bf16.msra.mxu1 %v699_v52 }
  0x4a   : > { %362 = vmatmul.bf16.vlgmr.msra.gmra.mxu0 %v257_v53  ;;  %536 = vmatpush.bf16.msra.mxu2 %v840_v0 }
  0x4b   : > { %375 = vmatmul.bf16.vlgmr.msra.gmra.mxu1 %v257_v53  ;;  %549 = vmatpush.bf16.msra.mxu3 %v848_v1 }
  0xc7   : > { %v363_v2 = vpop.f32.mrf.mxu0 }
  0xc8   : > { %v380_v3 = vmul.f32 %v363_v2, %v363_v2  ;;  %v376_v4 = vpop.f32.mrf.mxu1  ;;  %v390_v18 = vmul.f32 0.5, %v363_v2 }
  0xc9   : > { %v381_v5 = vmul.f32 %v376_v4, %v376_v4  ;;  %v391_v20 = vmul.f32 0.5, %v376_v4 }
  0xca   : > { %v382_v6 = vmul.f32 %v380_v3, %v363_v2 }
  0xcb   : > { %v383_v7 = vmul.f32 %v381_v5, %v376_v4 }
  0xcc   : > { %v384_v8 = vmul.f32 0.044715, %v382_v6 }
  0xcd   : > { %v385_v9 = vmul.f32 0.044715, %v383_v7 }
  0xce   : > { %v386_v10 = vadd.f32 %v384_v8, %v363_v2 }
  0xcf   : > { %v387_v11 = vadd.f32 %v385_v9, %v376_v4  ;;  %v365_v12 = vpop.f32.mrf.mxu0 }
  0xd0   : > { %v378_v13 = vpop.f32.mrf.mxu1  ;;  %v388_v14 = vmul.f32 0.7978846, %v386_v10 }
  0xd1   : > { %v389_v15 = vmul.f32 0.7978846, %v387_v11 }
  0xd2   : > { %943 = vtanh.f32 %v388_v14 }
  0xd3   : > { %945 = vtanh.f32 %v389_v15 }
  0xd8   : > { %v944_v16 = vpop.eup %943 }
  0xd9   : > { %v946_v17 = vpop.eup %945  ;;  %v394_v19 = vadd.f32 1.0, %v944_v16 }
  0xda   : > { %v395_v21 = vadd.f32 1.0, %v946_v17 }
  0xdb   : > { %v396_v22 = vmul.f32 %v394_v19, %v390_v18 }
  0xdc   : > { %v397_v23 = vmul.f32 %v395_v21, %v391_v20 }
  0xdd   : > { %v399_v24 = vpack.c.bf16 %v396_v22, %v396_v22 }
  0xde   : > { %v400_v25 = vpack.c.bf16 %v397_v23, %v397_v23 }
  0xdf   : > { %537 = vmatmul.bf16.vlgmr.msra.gmra.mxu2 %v399_v24 }
  0xe0   : > { %550 = vmatmul.bf16.vlgmr.msra.gmra.mxu3 %v400_v25 }
 0x162   : > { %v538_v26 = vpop.f32.mrf.mxu2 }
 0x163   : > { %v551_v27 = vpop.f32.mrf.mxu3 }
 0x164   : > { %v552_v28 = vadd.f32 %v551_v27, %v538_v26 }
 0x166   : > { %561 = vst [vmem:[%s248_s18] sm:$0xff] %v552_v28 }
 0x167   : > { %1064 = shalt.err (!%p1061_p13)
}
 0x168   : > { %866 = dma.vmem_to_hbm [thread:$0]  (%p1225_p0), %s576_s26, 128, %s578_s27, %s563_s28  }
 0x16a   : > { %v540_v29 = vpop.f32.mrf.mxu2 }
 0x16b   : > { %v553_v30 = vpop.f32.mrf.mxu3 }
 0x16c PF: > { %s589_s7 = sand.u32 1, %s1103_s12   ;;  %p880_p2 = pnand %p684_p6, %p1232_p5 }
 0x16d   : > { %s590_s10 = scalar_lea.sflag [#allocation5], %s589_s7 }
 0x16e   : > { %p881_p4 = pneg %p880_p2 }
 0x170   : > { %1098 = dma.done.wait (%p881_p4), %s590_s10, 128  }
 0x171   : > { %1100 = vsyncadd (%p881_p4), %s590_s10, 4294967168  ;;  %s20_s17 = sadd.s32 1, %s1123_s17   ;;  %s1311_s12 = smov %s1107_s13 }
 0x172   : > { %p17_p7 = scmp.ge.s32.totalorder %s20_s17, 4   ;;  %s1312_s13 = smov %s1111_s14 }
 0x173   : > { %s1313_s14 = smov %s1230_s22  ;;  %s1314_s15 = smov %s1119_s16 }
 0x174   : > { %s1315_s16 = smov %s1317_s8  ;;  %19 = sbr.rel (!%p17_p7) target bundleno = 7 (0x7), region = 95 }
 0x179   :  { %596 = vsyncpa [#allocation4], 1 }
 0x17a   :  { %598 = vsyncpa [#allocation4 + $0x1], 1 }
 0x17b   :  { %599 = vsyncpa [#allocation7], 1 }
 0x17c   :  { %600 = vsyncpa [#allocation5], 1 }
 0x17d   :  { %602 = vsyncpa [#allocation5 + $0x1], 1 }

</bundles_post_ra>
